<compile_context>
chip_gen: v7x
topology: tpu7x:2x2x1
jax: 0.10.0
libtpu: 0.0.40
codegen_flags: <defaults>
</compile_context>

<pallas_src>
import functools

import jax
import jax.numpy as jnp
from jax import lax
from jax.experimental import pallas as pl
from jax.experimental.pallas import tpu as pltpu


_BLOCK_BYTES_TARGET = 12 * 1024 * 1024   # ~12 MiB x-block; 2x double-buffered
_VMEM_LIMIT_BYTES = 48 * 1024 * 1024     # safe scoped VMEM on v5e/v6e/v7x


def _make_kernel(S, ts):
    """Build the kernel closure; S/ts are static so the tail mask only exists
    when the sequence length is not a multiple of the sequence tile."""
    needs_seq_mask = (S % ts) != 0

    def kernel(x_ref, w_ref, b_ref, o_ref, num_acc, den_acc):
        # x_ref:   (TB, TS, D) input tile (native dtype)
        # w_ref:   (1, D)      final_proj weight (VMEM, grid-invariant)
        # b_ref:   (1,)        final_proj bias (SMEM scalar)
        # o_ref:   (TB, 1)     output tile (written on last seq step only)
        # num_acc: (TB, D) f32 running sum over the sequence axis
        # den_acc: (TB, 1) f32 running count of non-zero sequence positions
        k = pl.program_id(1)

        @pl.when(k == 0)
        def _():
            num_acc[...] = jnp.zeros_like(num_acc)
            den_acc[...] = jnp.zeros_like(den_acc)

        x = x_ref[...]                                   # native dtype
        if needs_seq_mask:
            # Zero padded sequence rows of the (possibly partial) last block.
            pos = lax.broadcasted_iota(jnp.int32, (1, ts, 1), 1)
            valid = (k * ts + pos) < S                   # (1, TS, 1)
            x = jnp.where(valid, x, jnp.zeros_like(x))

        # mask = x.ne(0).any(dim=-1): masked rows are all-zero by construction
        # so the numerator does NOT need (x * mask) -- a plain sum is equal.
        mask = jnp.any(x != 0, axis=-1, keepdims=True)   # (TB, TS, 1) bool
        num_acc[...] += jnp.sum(x, axis=1, dtype=jnp.float32)       # (TB, D)
        den_acc[...] += jnp.sum(mask.astype(jnp.float32), axis=1)   # (TB, 1)

        @pl.when(k == pl.num_programs(1) - 1)
        def _():
            # Linear(D -> 1) on VPU + XLU lane reduce, then divide AFTER the
            # reduction (den is per-row, so this is mathematically identical
            # to dividing pooled first, incl. the 0/0 -> NaN all-zero case).
            w = w_ref[...].astype(jnp.float32)                       # (1, D)
            num_dot = jnp.sum(num_acc[...] * w, axis=-1, keepdims=True)
            logit = num_dot / den_acc[...] + b_ref[0]
            o_ref[...] = jax.nn.sigmoid(logit)

    return kernel


def _choose_blocks(B, S, D, dtype, block_bytes):
    """Pick (tb, ts). tb is a multiple of 8 or == B (output sublane rule);
    ts is a dtype-aware sublane multiple or == S. Grids use cdiv + in-kernel
    masking, so awkward B/S never blow up the block size."""
    itemsize = jnp.dtype(dtype).itemsize
    sub = {4: 8, 2: 16, 1: 32}.get(itemsize, 8)   # dtype-aware sublane multiple

    # Batch tile: cap per-tile accumulator / epilogue cost.
    tb = B if B <= 64 else 64
    # If D alone is huge, shrink the batch tile so one (tb, sub, D) slab still
    # fits the budget -- never above B, never below 8.
    slab = sub * D * itemsize
    max_tb = max(1, block_bytes // max(1, slab))
    if tb > max_tb and B > 8:
        tb = max(8, (max_tb // 8) * 8)

    # Sequence tile (streaming axis): as large as the byte budget allows.
    row_bytes = max(1, tb * D * itemsize)
    ts_cap = max(sub, (block_bytes // row_bytes) // sub * sub)
    ts = S if S <= ts_cap else ts_cap
    return tb, ts


@functools.partial(jax.jit, static_argnames=("block_bytes",))
def pred_output_layer(x, w, b, *, block_bytes=_BLOCK_BYTES_TARGET):
    """x: (B, S, D), w: (1, D), b: (1,). Returns (B, 1) float32."""
    B, S, D = x.shape
    itemsize = jnp.dtype(x.dtype).itemsize
    tb, ts = _choose_blocks(B, S, D, x.dtype, block_bytes)
    grid = (pl.cdiv(B, tb), pl.cdiv(S, ts))

    cost = pl.CostEstimate(
        flops=3 * B * S * D + 2 * B * D,        # compare+sum stream + D->1 dot
        transcendentals=B,                       # sigmoid
        bytes_accessed=B * S * D * itemsize + D * 4 + B * 4 + 4,
    )

    return pl.pallas_call(
        _make_kernel(S, ts),
        out_shape=jax.ShapeDtypeStruct((B, 1), jnp.float32),
        grid_spec=pltpu.PrefetchScalarGridSpec(
            num_scalar_prefetch=0,
            grid=grid,
            in_specs=[
                pl.BlockSpec((tb, ts, D), lambda i, k: (i, k, 0)),
                pl.BlockSpec((1, D), lambda i, k: (0, 0)),           # weight
                pl.BlockSpec(memory_space=pltpu.MemorySpace.SMEM),   # bias
            ],
            out_specs=pl.BlockSpec((tb, 1), lambda i, k: (i, 0)),
            scratch_shapes=[
                pltpu.VMEM((tb, D), jnp.float32),   # numerator accumulator
                pltpu.VMEM((tb, 1), jnp.float32),   # denominator accumulator
            ],
        ),
        compiler_params=pltpu.CompilerParams(
            dimension_semantics=("parallel", "arbitrary"),
            vmem_limit_bytes=_VMEM_LIMIT_BYTES,
        ),
        cost_estimate=cost,
    )(x, w, b)


def _reference(x, w, b):
    mask = jnp.any(x != 0, axis=-1, keepdims=True).astype(x.dtype)
    pooled = jnp.sum(x * mask, axis=1) / jnp.sum(mask, axis=1)
    logit = pooled @ w.T + b
    return jax.nn.sigmoid(logit)


if __name__ == "__main__":
    key = jax.random.PRNGKey(0)
    kx, kw, kb, kx2 = jax.random.split(key, 4)

    # Primary test: shapes consistent with the module (batch=2, seq=8, dim=32).
    B, S, D = 2, 8, 32
    x = jax.random.normal(kx, (B, S, D), dtype=jnp.float32)
    x = x.at[0, 5:, :].set(0.0)     # make the mask do something
    x = x.at[1, 2, :].set(0.0)

    bound = 1.0 / (D ** 0.5)
    w = jax.random.uniform(kw, (1, D), jnp.float32, -bound, bound)
    b = jax.random.uniform(kb, (1,), jnp.float32, -bound, bound)

    pred = jax.block_until_ready(pred_output_layer(x, w, b))
    ref = _reference(x, w, b)
    assert pred.shape == (B, 1)
    assert jnp.allclose(pred, ref, atol=1e-5, rtol=1e-5)

    # Secondary test: non-divisible sequence length + forced small block budget
    # exercises the cdiv grid and the in-kernel sequence tail mask.
    B2, S2, D2 = 2, 20, 128
    x2 = jax.random.normal(kx2, (B2, S2, D2), dtype=jnp.float32)
    x2 = x2.at[0, 13:, :].set(0.0)
    x2 = x2.at[1, 0, :].set(0.0)
    w2 = jax.random.uniform(kw, (1, D2), jnp.float32, -bound, bound)
    pred2 = jax.block_until_ready(pred_output_layer(x2, w2, b, block_bytes=4096))
    assert jnp.allclose(pred2, _reference(x2, w2, b), atol=1e-5, rtol=1e-5)

    print("KERNEL_OK")
</pallas_src>

<mosaic_0001>
module attributes {stable_mosaic.version = 11 : i64} {
  func.func @kernel(%arg0: i32, %arg1: i32, %arg2: memref<2x8x32xf32, #tpu.memory_space<vmem>>, %arg3: memref<1x32xf32, #tpu.memory_space<vmem>>, %arg4: memref<1xf32, #tpu.memory_space<smem>>, %arg5: memref<2x1xf32, #tpu.memory_space<vmem>>, %arg6: memref<2x32xf32, #tpu.memory_space<vmem>>, %arg7: memref<2x1xf32, #tpu.memory_space<vmem>>) attributes {dimension_semantics = [#tpu.dimension_semantics<parallel>, #tpu.dimension_semantics<arbitrary>], iteration_bounds = array<i64: 1, 1>, scalar_prefetch = 0 : i64, scratch_operands = 2 : i64, tpu.core_type = #tpu.core_type<tc>, window_params = [{transform_indices = @transform_0, window_bounds = array<i64: 2, 8, 32>}, {pipeline_mode = #tpu.pipeline_mode<synchronous>, transform_indices = @transform_1, window_bounds = array<i64: 1, 32>}, {transform_indices = @transform_2, window_bounds = array<i64: 1>}, {transform_indices = @transform_3, window_bounds = array<i64: 2, 1>}]} {
    %c0_i32 = arith.constant 0 : i32
    %0 = arith.cmpi eq, %arg1, %c0_i32 : i32
    %1 = arith.extui %0 : i1 to i32
    %c0_i32_0 = arith.constant 0 : i32
    %2 = arith.cmpi ne, %1, %c0_i32_0 : i32
    scf.if %2 {
      %cst_19 = arith.constant 0.000000e+00 : f32
      %26 = vector.broadcast %cst_19 : f32 to vector<2x32xf32>
      %c0_20 = arith.constant 0 : index
      %c0_21 = arith.constant 0 : index
      %27 = vector.load %arg6[%c0_20, %c0_21] : memref<2x32xf32, #tpu.memory_space<vmem>>, vector<2x32xf32>
      tpu.vector_store %arg6[%c0_20, %c0_21], %26 {strides = array<i32>} : memref<2x32xf32, #tpu.memory_space<vmem>>, vector<2x32xf32>,
      %cst_22 = arith.constant 0.000000e+00 : f32
      %28 = vector.broadcast %cst_22 : f32 to vector<2x1xf32>
      %c0_23 = arith.constant 0 : index
      %c0_24 = arith.constant 0 : index
      %29 = vector.load %arg7[%c0_23, %c0_24] : memref<2x1xf32, #tpu.memory_space<vmem>>, vector<2x1xf32>
      tpu.vector_store %arg7[%c0_23, %c0_24], %28 {strides = array<i32>} : memref<2x1xf32, #tpu.memory_space<vmem>>, vector<2x1xf32>,
    } else {
    }
    %c0 = arith.constant 0 : index
    %c0_1 = arith.constant 0 : index
    %c0_2 = arith.constant 0 : index
    %3 = vector.load %arg2[%c0, %c0_1, %c0_2] : memref<2x8x32xf32, #tpu.memory_space<vmem>>, vector<2x8x32xf32>
    %cst = arith.constant 0.000000e+00 : f32
    %4 = vector.broadcast %cst : f32 to vector<2x8x32xf32>
    %5 = arith.cmpf one, %3, %4 : vector<2x8x32xf32>
    %cst_3 = arith.constant 1.000000e+00 : f32
    %cst_4 = arith.constant 0.000000e+00 : f32
    %6 = vector.broadcast %cst_3 : f32 to vector<2x8x32xf32>
    %7 = vector.broadcast %cst_4 : f32 to vector<2x8x32xf32>
    %8 = arith.select %5, %6, %7 : vector<2x8x32xi1>, vector<2x8x32xf32>
    %cst_5 = arith.constant dense<0xFF800000> : vector<2x8xf32>
    %9 = vector.multi_reduction <maximumf>, %8, %cst_5 [2] : vector<2x8x32xf32> to vector<2x8xf32>
    %cst_6 = arith.constant 0.000000e+00 : f32
    %10 = vector.broadcast %cst_6 : f32 to vector<2x8xf32>
    %11 = arith.cmpf ogt, %9, %10 : vector<2x8xf32>
    %12 = vector.shape_cast %11 : vector<2x8xi1> to vector<2x8x1xi1>
    %c0_7 = arith.constant 0 : index
    %c0_8 = arith.constant 0 : index
    %13 = vector.load %arg6[%c0_7, %c0_8] : memref<2x32xf32, #tpu.memory_space<vmem>>, vector<2x32xf32>
    %cst_9 = arith.constant dense<0.000000e+00> : vector<2x32xf32>
    %14 = vector.multi_reduction <add>, %3, %cst_9 [1] : vector<2x8x32xf32> to vector<2x32xf32>
    %15 = arith.addf %13, %14 : vector<2x32xf32>
    %c0_10 = arith.constant 0 : index
    %c0_11 = arith.constant 0 : index
    %16 = vector.load %arg6[%c0_10, %c0_11] : memref<2x32xf32, #tpu.memory_space<vmem>>, vector<2x32xf32>
    tpu.vector_store %arg6[%c0_10, %c0_11], %15 {strides = array<i32>} : memref<2x32xf32, #tpu.memory_space<vmem>>, vector<2x32xf32>,
    %c0_12 = arith.constant 0 : index
    %c0_13 = arith.constant 0 : index
    %17 = vector.load %arg7[%c0_12, %c0_13] : memref<2x1xf32, #tpu.memory_space<vmem>>, vector<2x1xf32>
    %18 = arith.extui %12 : vector<2x8x1xi1> to vector<2x8x1xi32>
    %19 = arith.sitofp %18 : vector<2x8x1xi32> to vector<2x8x1xf32>
    %cst_14 = arith.constant dense<0.000000e+00> : vector<2x1xf32>
    %20 = vector.multi_reduction <add>, %19, %cst_14 [1] : vector<2x8x1xf32> to vector<2x1xf32>
    %21 = arith.addf %17, %20 : vector<2x1xf32>
    %c0_15 = arith.constant 0 : index
    %c0_16 = arith.constant 0 : index
    %22 = vector.load %arg7[%c0_15, %c0_16] : memref<2x1xf32, #tpu.memory_space<vmem>>, vector<2x1xf32>
    tpu.vector_store %arg7[%c0_15, %c0_16], %21 {strides = array<i32>} : memref<2x1xf32, #tpu.memory_space<vmem>>, vector<2x1xf32>,
    %c0_i32_17 = arith.constant 0 : i32
    %23 = arith.cmpi eq, %arg1, %c0_i32_17 : i32
    %24 = arith.extui %23 : i1 to i32
    %c0_i32_18 = arith.constant 0 : i32
    %25 = arith.cmpi ne, %24, %c0_i32_18 : i32
    scf.if %25 {
      %c0_19 = arith.constant 0 : index
      %c0_20 = arith.constant 0 : index
      %26 = vector.load %arg3[%c0_19, %c0_20] : memref<1x32xf32, #tpu.memory_space<vmem>>, vector<1x32xf32>
      %c0_21 = arith.constant 0 : index
      %c0_22 = arith.constant 0 : index
      %27 = vector.load %arg6[%c0_21, %c0_22] : memref<2x32xf32, #tpu.memory_space<vmem>>, vector<2x32xf32>
      %28 = vector.broadcast %26 : vector<1x32xf32> to vector<2x32xf32>
      %29 = arith.mulf %27, %28 : vector<2x32xf32>
      %cst_23 = arith.constant dense<0.000000e+00> : vector<2xf32>
      %30 = vector.multi_reduction <add>, %29, %cst_23 [1] : vector<2x32xf32> to vector<2xf32>
      %31 = vector.shape_cast %30 : vector<2xf32> to vector<2x1xf32>
      %c0_24 = arith.constant 0 : index
      %c0_25 = arith.constant 0 : index
      %32 = vector.load %arg7[%c0_24, %c0_25] : memref<2x1xf32, #tpu.memory_space<vmem>>, vector<2x1xf32>
      %33 = arith.divf %31, %32 : vector<2x1xf32>
      %c0_26 = arith.constant 0 : index
      %34 = memref.load %arg4[%c0_26] : memref<1xf32, #tpu.memory_space<smem>>
      %35 = vector.broadcast %34 : f32 to vector<2x1xf32>
      %36 = arith.addf %33, %35 : vector<2x1xf32>
      %37 = arith.negf %36 : vector<2x1xf32>
      %38 = math.exp %37 : vector<2x1xf32>
      %cst_27 = arith.constant 1.000000e+00 : f32
      %39 = vector.broadcast %cst_27 : f32 to vector<2x1xf32>
      %40 = arith.addf %39, %38 : vector<2x1xf32>
      %41 = arith.divf %39, %40 : vector<2x1xf32>
      %c0_28 = arith.constant 0 : index
      %c0_29 = arith.constant 0 : index
      %42 = vector.load %arg5[%c0_28, %c0_29] : memref<2x1xf32, #tpu.memory_space<vmem>>, vector<2x1xf32>
      tpu.vector_store %arg5[%c0_28, %c0_29], %41 {strides = array<i32>} : memref<2x1xf32, #tpu.memory_space<vmem>>, vector<2x1xf32>,
    } else {
    }
    return
  }
  func.func @transform_0(%arg0: i32, %arg1: i32) -> (i32, i32, i32) {
    %c0_i32 = arith.constant 0 : i32
    %c0_i32_0 = arith.constant 0 : i32
    return %arg0, %arg1, %c0_i32 : i32, i32, i32
  }
  func.func @transform_1(%arg0: i32, %arg1: i32) -> (i32, i32) {
    %c0_i32 = arith.constant 0 : i32
    %c0_i32_0 = arith.constant 0 : i32
    %c0_i32_1 = arith.constant 0 : i32
    return %c0_i32, %c0_i32_0 : i32, i32
  }
  func.func @transform_2(%arg0: i32, %arg1: i32) -> i32 {
    %c0_i32 = arith.constant 0 : i32
    %c0_i32_0 = arith.constant 0 : i32
    return %c0_i32 : i32
  }
  func.func @transform_3(%arg0: i32, %arg1: i32) -> (i32, i32) {
    %c0_i32 = arith.constant 0 : i32
    %c0_i32_0 = arith.constant 0 : i32
    return %arg0, %c0_i32 : i32, i32
  }
}

</mosaic_0001>

<bundles_post_ra>
// kernel: pred_output_layer.1
= control target key start
LH: loop header
LB: loop body
LE: loop exit
PB: predicated region body
PF: predicated region fallthrough
CT: control target
= control target key end

     0   :  { %9 = vsyncpa [#allocation6], 0  ;;  %s170_s12 = smov [#allocation5]   ;;  %s223_s0 = inlined_call_operand.hbm [shape: f32[2,8,32], index: 0, kind: input, shape index: {}]   ;;  %s224_s1 = inlined_call_operand.vmem [shape: f32[1,32], index: 1, kind: input, shape index: {}]   ;;  %s225_s2 = inlined_call_operand.<no memory space> [shape: f32[1], index: 2, kind: input, shape index: {}]   ;;  %s226_s3 = inlined_call_operand.vmem [shape: f32[2,1], index: 3, kind: output, shape index: {}]  }
   0x1   :  { %s15_s13 = sshll.u32 %s170_s12, 4  ;;  %s146_s16 = scalar_lea.hbm %s223_s0, 256  ;;  %s16_s13 = int_to_ptr.vmem [resolvable:$true] %s15_s13 }
   0x2   :  { %p147_p0 = scmp.ne.s32.totalorder %s223_s0, %s146_s16  ;;  %p150_p1 = scmp.lt.u32.totalorder %s146_s16, %s223_s0 }
   0x4   :  { %p152_p2 = pnand %p150_p1, %p147_p0 }
   0x6   :  { %155 = shalt.err (!%p152_p2)
}
   0x7   :  { %s156_s21 = scalar_lea.vmem %s16_s13, 256  ;;  %p161_p4 = scmp.lt.s32.totalorder %s16_s13, %s16_s13 }
   0x8   :  { %p157_p3 = scmp.ne.s32.totalorder %s16_s13, %s156_s21  ;;  %p162_p5 = scmp.lt.s32.totalorder %s156_s21, %s156_s21 }
   0xa   :  { %p163_p6 = por %p162_p5, %p161_p4 }
   0xc   :  { %p164_p7 = pnand %p163_p6, %p157_p3 }
   0xe   :  { %167 = shalt.err (!%p164_p7)
}
   0xf   :  { %s171_s22 = smov 128   ;;  %s172_s23 = smov 8  }
  0x10   :  { %21 = dma.hbm_to_vmem [thread:$0]  %s223_s0, 256, %s16_s13, [#allocation6], %s171_s22, %s171_s22, %s172_s23  }
  0x11   :  { %168 = dma.done.wait [#allocation6], 256  }
  0x12   :  { %169 = vsyncadd [#allocation6], 4294967040  ;;  %vm35_vm0 = vcmask 1024   ;;  %v173_v0 = vmov 0.0   ;;  %vm33_vm1 = vcmask 254976   ;;  %v37_v1 = vld [vmem:[#allocation5] sm:$0xff]  ;;  %v118_v50 = vstv %s225_s2 }
  0x13   :  { %36 = vst.msk [vmem:[#allocation3] sm:$0x3] %vm35_vm0, %v173_v0  ;;  %vm43_vm2 = vcmask 261120   ;;  %v38_v2 = vld [vmem:[#allocation5 + $0x8] sm:$0xff]  ;;  %vm39_vm3 = vcmp.ne.f32.partialorder %v37_v1, 0.0  ;;  %vm69_vm5 = vcmask 1041409  }
  0x14   :  { %34 = vst.msk [vmem:[#allocation2] sm:$0x3] %vm33_vm1, %v173_v0  ;;  %v53_v3 = vsel %vm43_vm2, %v37_v1, 0.0  ;;  %vm40_vm4 = vcmp.ne.f32.partialorder %v38_v2, 0.0  ;;  %v60_v4 = vsel %vm43_vm2, %v38_v2, 0.0  ;;  %v41_v5 = vsel %vm39_vm3, 1.0, %v173_v0 }
  0x15   :  { %v54_v6 = vrot.slane %v53_v3, 4  ;;  %v42_v7 = vsel %vm40_vm4, 1.0, %v173_v0  ;;  %v61_v8 = vrot.slane %v60_v4, 4  ;;  %v44_v9 = vsel %vm43_vm2, %v41_v5, -inf  ;;  %v134_v24 = vld [vmem:[%s224_s1] ss:$0 sm:$0xff] }
  0x16   :  { %45 = vmax.xlane.f32.xlu0 %v44_v9  ;;  %v47_v12 = vsel %vm43_vm2, %v42_v7, -inf }
  0x17   :  { %v55_v10 = vadd.f32 %v54_v6, %v53_v3  ;;  %v62_v11 = vadd.f32 %v61_v8, %v60_v4 }
  0x19   :  { %v56_v13 = vrot.slane %v55_v10, 2  ;;  %v63_v14 = vrot.slane %v62_v11, 2 }
  0x1a   :  { %48 = vmax.xlane.f32.xlu0 %v47_v12  ;;  %v75_v43 = vld [vmem:[#allocation3] sm:$0x3] }
  0x1b   :  { %v57_v15 = vadd.f32 %v56_v13, %v55_v10  ;;  %v64_v16 = vadd.f32 %v63_v14, %v62_v11  ;;  %v52_v21 = vld [vmem:[#allocation2] sm:$0x3] }
  0x1d   :  { %v58_v17 = vrot.slane %v57_v15, 1  ;;  %v65_v18 = vrot.slane %v64_v16, 1 }
  0x1f   :  { %v59_v19 = vadd.f32 %v58_v17, %v57_v15  ;;  %v66_v20 = vadd.f32 %v65_v18, %v64_v16 }
  0x21   :  { %v70_v22 = vsel %vm69_vm5, %v66_v20, %v59_v19 }
  0x22   :  { %v72_v23 = vadd.f32 %v70_v22, %v52_v21 }
  0x24   :  { %74 = vst.msk [vmem:[#allocation2] sm:$0x3] %vm33_vm1, %v72_v23 }
  0x2b   :  { %v103_v25 = vld [vmem:[#allocation2] sm:$0x3] }
  0x2c   :  { %v110_v26 = vmul.f32 %v134_v24, %v103_v25 }
  0x2e   :  { %v111_v27 = vsel %vm33_vm1, %v110_v26, 0.0 }
  0x2f   :  { %112 = vadd.xlane.f32.xlu1 %v111_v27 }
  0xa3   :  { %v46_v28 = vpop.xlane.xlu0 %45 }
  0xa4   :  { %vm50_vm6 = vcmp.gt.f32.partialorder %v46_v28, 0.0 }
  0xa5   :  { %v132_v29 = vsel %vm50_vm6, 1.0, %v173_v0 }
  0xa6   :  { %v80_v30 = vrot.slane %v132_v29, 4 }
  0xa7   :  { %v49_v31 = vpop.xlane.xlu0 %48 }
  0xa8   :  { %v81_v32 = vadd.f32 %v132_v29, %v80_v30  ;;  %vm51_vm7 = vcmp.gt.f32.partialorder %v49_v31, 0.0 }
  0xa9   :  { %v133_v33 = vsel %vm51_vm7, 1.0, %v173_v0 }
  0xaa   :  { %v82_v34 = vrot.slane %v81_v32, 2  ;;  %v86_v35 = vrot.slane %v133_v33, 4 }
  0xac   :  { %v83_v36 = vadd.f32 %v82_v34, %v81_v32  ;;  %v87_v37 = vadd.f32 %v133_v33, %v86_v35 }
  0xae   :  { %v88_v38 = vrot.slane %v87_v37, 2  ;;  %v84_v39 = vrot.slane %v83_v36, 1 }
  0xb0   :  { %v89_v40 = vadd.f32 %v88_v38, %v87_v37  ;;  %v85_v42 = vadd.f32 %v84_v39, %v83_v36 }
  0xb2   :  { %v90_v41 = vrot.slane %v89_v40, 1 }
  0xb4   :  { %v91_v44 = vadd.f32 %v90_v41, %v89_v40 }
  0xb6   :  { %v94_v45 = vsel %vm69_vm5, %v91_v44, %v85_v42 }
  0xb7   :  { %v96_v46 = vadd.f32 %v94_v45, %v75_v43 }
  0xb9   :  { %98 = vst.msk [vmem:[#allocation3] sm:$0x3] %vm35_vm0, %v96_v46 }
  0xbc   :  { %v113_v48 = vpop.xlane.xlu1 %112 }
  0xc0   :  { %v114_v47 = vld [vmem:[#allocation3] sm:$0x3] }
  0xc1   :  { %140 = vrcp.f32 %v114_v47 }
  0xcb   :  { %v141_v49 = vpop.eup %140 }
  0xcc   :  { %v116_v51 = vmul.f32 %v141_v49, %v113_v48 }
  0xce   :  { %v119_v52 = vadd.f32 %v118_v50, %v116_v51 }
  0xd0   :  { %v135_v53 = vmul.f32 -1.442695, %v119_v52 }
  0xd2   :  { %142 = vpow2.f32 %v135_v53 }
  0xdc   :  { %v143_v54 = vpop.eup %142 }
  0xdd   :  { %v123_v55 = vadd.f32 1.0, %v143_v54 }
  0xdf   :  { %144 = vrcp.f32 %v123_v55 }
  0xe9   :  { %v145_v56 = vpop.eup %144 }
  0xea   :  { %126 = vst.msk [vmem:[%s226_s3] sm:$0x3] %vm35_vm0, %v145_v56 }
  0xeb   :  { %131 = vsyncpa [#allocation6], 1 }

</bundles_post_ra>
